<compile_context>
chip_gen: v7x
topology: tpu7x:2x2x1
jax: 0.10.0
libtpu: 0.0.40
codegen_flags: <defaults>
</compile_context>

<pallas_src>
import functools
import math

import jax
import jax.numpy as jnp
from jax.experimental import pallas as pl
from jax.experimental.pallas import tpu as pltpu


def _contrastive_kernel(im_ref, st_ref, si_ref, sc_ref, rgid_ref, cgid_ref,
                        col_part_ref, row_part_ref, *, max_violation):
    """One independent row-tile of the contrastive loss.

    im_ref       : [TM, D] compute-dtype row tile of image embeddings
    st_ref       : [D,  N] all caption embeddings, pre-transposed (resident)
    si_ref       : [TM, 1] f32 per-row   block-min minus margin
    sc_ref       : [1,  N] f32 per-col   block-min minus margin
    rgid_ref     : [TM, 1] int32 row group ids    (only read when masking)
    cgid_ref     : [1,  N] int32 column group ids (only read when masking)
    col_part_ref : [1,  N] f32 per-column partial (sum or max) of cost_im
    row_part_ref : [TM, 1] f32 per-row   partial (sum or max) of cost_s
    """
    # Standard [M,K] x [K,N] MXU form; contraction dim already on lanes of im
    # and sublanes of s^T, output N on lanes -> lane-dense stores.
    scores = jnp.dot(im_ref[...], st_ref[...],
                     preferred_element_type=jnp.float32)            # [TM, N]

    zero = jnp.float32(0.0)
    # margin is already folded into si/sc (si = block_min - margin).
    cost_s = jnp.maximum(scores - si_ref[...], zero)
    cost_im = jnp.maximum(scores - sc_ref[...], zero)

    if max_violation:
        # VSE++: hardest negative -> positive pairs must be masked before max.
        keep = rgid_ref[...] != cgid_ref[...]                       # [TM, N]
        cost_s = jnp.where(keep, cost_s, zero)
        cost_im = jnp.where(keep, cost_im, zero)
        col_part_ref[...] = jnp.max(cost_im, axis=0, keepdims=True)
        row_part_ref[...] = jnp.max(cost_s, axis=1, keepdims=True)
    else:
        # VSE0: sums are additive -> the block-diagonal (positive-pair)
        # contribution is subtracted in the wrapper, no in-kernel mask needed.
        col_part_ref[...] = jnp.sum(cost_im, axis=0, keepdims=True)
        row_part_ref[...] = jnp.sum(cost_s, axis=1, keepdims=True)


def _pick_block_rows(n, step, target):
    """Largest row tile <= target that divides n and is a multiple of step."""
    for c in range(min(target, n), 0, -1):
        if n % c == 0 and c % step == 0:
            return c
    return n   # full-extent block is always legal


def _default_tm_target():
    try:
        kind = jax.devices()[0].device_kind.lower()
    except Exception:
        return 256
    # v5e: 4x128 MXU, single vst slot -> smaller f32 epilogue temporaries.
    if "v5 lite" in kind or "v5lite" in kind or "v5e" in kind:
        return 128
    return 256   # v6e / v7x: matches the 256-wide MXU tile


def _vmem_budget_bytes():
    cap = None
    try:
        info = pltpu.get_tpu_info()
        for name in ("vmem_capacity_bytes", "vmem_size_bytes", "vmem_bytes"):
            cap = getattr(info, name, None)
            if cap:
                break
    except Exception:
        cap = None
    if not cap:
        cap = 64 * 2**20          # conservative default (v7x-sized VMEM)
    return int(0.85 * cap)        # leave headroom for Mosaic internal scratch


# Flipped to False at runtime if this Pallas build rejects pipeline_mode /
# Buffered(1) on resident (grid-invariant) inputs.
_SINGLE_BUFFER_RESIDENT = True


def contrastive_loss(im, s, *, hardnum, margin=0.0, max_violation=False,
                     compute_dtype=None, block_rows=None):
    """Pallas-TPU ContrastiveLoss.forward.  Returns (cost_im_sum, cost_s_sum)."""
    global _SINGLE_BUFFER_RESIDENT

    N, D = im.shape
    assert s.shape == (N, D)
    assert N % hardnum == 0, "batch must be a multiple of hardnum"

    if compute_dtype is None:
        compute_dtype = im.dtype
    imc = im.astype(compute_dtype)
    s_c = s.astype(compute_dtype)
    s_t = s_c.T                                  # [D, N], one-time transpose

    # ---- cheap pre-pass: block-diagonal inner products + mins, O(N*h*D) ----
    # TODO(synk): for HBM-bound small batches, fold this pre-pass into the
    # kernel (row block-mins are recoverable from each tile's own scores).
    G = N // hardnum
    inner = jnp.einsum(
        "ghd,gkd->ghk",
        imc.reshape(G, hardnum, D), s_c.reshape(G, hardnum, D),
        preferred_element_type=jnp.float32)                        # [G, h, h]
    m = jnp.float32(margin)
    si_blk = inner.min(axis=2) - m                                 # [G, h]
    sc_blk = inner.min(axis=1) - m                                 # [G, h]
    si_m = si_blk.reshape(N, 1).astype(jnp.float32)                # [N, 1]
    sc_m = sc_blk.reshape(1, N).astype(jnp.float32)                # [1, N]

    gid = jnp.arange(N, dtype=jnp.int32) // hardnum
    rgid = gid.reshape(N, 1)
    cgid = gid.reshape(1, N)

    # ---- row tiling / VMEM budgeting ----
    itemsize = jnp.dtype(compute_dtype).itemsize
    sublane = {4: 8, 2: 16, 1: 32}.get(itemsize, 8)
    vmem_budget = _vmem_budget_bytes()

    def est_bytes(tm_, s_copies):
        return (2 * tm_ * D * itemsize            # im row tile, double buffered
                + s_copies * N * D * itemsize     # resident s^T
                + 4 * tm_ * N * 4                 # live f32 [TM,N] temporaries
                + 8 * (tm_ + N) * 4               # mins / group ids / out blocks
                + (1 << 20))                      # Mosaic internal scratch slack

    if block_rows is None:
        tm = _pick_block_rows(N, sublane, _default_tm_target())
        # Size conservatively assuming s^T ends up double-buffered.
        while est_bytes(tm, 2) > vmem_budget and tm > sublane:
            smaller = _pick_block_rows(N, sublane, tm // 2)
            if smaller >= tm:
                break
            tm = smaller
        # TODO(synk): if even the smallest row tile does not fit (huge N*D on
        # v7x's 64 MiB), fall back to a 2-D grid that also tiles the columns
        # of s^T (block (D, TN), column axis innermost/"arbitrary").
    else:
        tm = block_rows
    assert N % tm == 0
    num_tiles = N // tm
    grid = (num_tiles,)

    kernel = functools.partial(_contrastive_kernel,
                               max_violation=bool(max_violation))
    out_shape = (jax.ShapeDtypeStruct((num_tiles, N), jnp.float32),
                 jax.ShapeDtypeStruct((N, 1), jnp.float32))

    def build(single_buffer_resident):
        res_kw = ({"pipeline_mode": pl.Buffered(1)}
                  if single_buffer_resident else {})
        in_specs = [
            pl.BlockSpec((tm, D), lambda t: (t, 0)),              # im row tile
            pl.BlockSpec((D, N), lambda t: (0, 0), **res_kw),     # s^T resident
            pl.BlockSpec((tm, 1), lambda t: (t, 0)),              # row block-min - m
            pl.BlockSpec((1, N), lambda t: (0, 0), **res_kw),     # col block-min - m
            pl.BlockSpec((tm, 1), lambda t: (t, 0)),              # row group ids
            pl.BlockSpec((1, N), lambda t: (0, 0), **res_kw),     # col group ids
        ]
        out_specs = [
            pl.BlockSpec((1, N), lambda t: (t, 0)),               # per-col partials
            pl.BlockSpec((tm, 1), lambda t: (t, 0)),              # per-row partials
        ]
        return pl.pallas_call(
            kernel,
            out_shape=out_shape,
            grid_spec=pltpu.PrefetchScalarGridSpec(
                num_scalar_prefetch=0, grid=grid,
                in_specs=in_specs, out_specs=out_specs),
            compiler_params=pltpu.CompilerParams(
                # Partial outputs per tile -> no cross-step carry -> safe to
                # split across TensorCores on v7x megacore.
                dimension_semantics=("parallel",),
                vmem_limit_bytes=vmem_budget),
            cost_estimate=pl.CostEstimate(
                flops=2 * N * N * D, transcendentals=0,
                bytes_accessed=2 * N * D * itemsize + (num_tiles + 1) * N * 4),
        )

    args = (imc, s_t, si_m, sc_m, rgid, cgid)
    col_part = row_part = None
    if _SINGLE_BUFFER_RESIDENT:
        try:
            col_part, row_part = build(True)(*args)
        except Exception:
            _SINGLE_BUFFER_RESIDENT = False     # hint unsupported; retry plain
    if col_part is None:
        col_part, row_part = build(False)(*args)

    # ---- tiny wrapper-side finalization ----
    if max_violation:
        cost_im = jnp.sum(jnp.max(col_part, axis=0))     # hardest per column
        cost_s = jnp.sum(row_part)                        # per-row maxes summed
    else:
        # Kernel summed over ALL columns; subtract the block-diagonal
        # (positive-pair) contribution computed from `inner`.
        corr_im = jnp.sum(jnp.maximum(inner - sc_blk[:, None, :], 0.0))
        corr_s = jnp.sum(jnp.maximum(inner - si_blk[:, :, None], 0.0))
        cost_im = jnp.sum(col_part) - corr_im
        cost_s = jnp.sum(row_part) - corr_s
    return cost_im, cost_s


def _reference(im, s, *, hardnum, margin=0.0, max_violation=False):
    """Pure-JAX reference mirroring the PyTorch code."""
    scores = im.astype(jnp.float32) @ s.astype(jnp.float32).T
    N = scores.shape[0]
    idx = jnp.arange(N)
    I = (idx[:, None] // hardnum) == (idx[None, :] // hardnum)
    masked = jnp.where(I, scores, jnp.inf)
    scores_image = jnp.min(masked, axis=1, keepdims=True)
    scores_caption = jnp.min(masked, axis=0, keepdims=True)
    cost_s = jnp.maximum(margin + scores - scores_image, 0.0)
    cost_im = jnp.maximum(margin + scores - scores_caption, 0.0)
    cost_s = jnp.where(I, 0.0, cost_s)
    cost_im = jnp.where(I, 0.0, cost_im)
    if max_violation:
        cost_im = jnp.max(cost_im, axis=0)
        cost_s = jnp.max(cost_s, axis=1)
    return jnp.sum(cost_im), jnp.sum(cost_s)


if __name__ == "__main__":
    key = jax.random.PRNGKey(0)
    k_im, k_s, k_im2, k_s2 = jax.random.split(key, 4)

    ok = True
    margin = 0.2

    # --- small shape (batch=8 -> 4 groups of hardnum=2, hidden=32) ---
    N, D, hardnum = 8, 32, 2
    im = jax.random.normal(k_im, (N, D), dtype=jnp.float32)
    s = jax.random.normal(k_s, (N, D), dtype=jnp.float32)
    for max_violation in (False, True):
        ci, cs = contrastive_loss(im, s, hardnum=hardnum, margin=margin,
                                  max_violation=max_violation)
        ci = jax.block_until_ready(ci)
        cs = jax.block_until_ready(cs)
        ci_r, cs_r = _reference(im, s, hardnum=hardnum, margin=margin,
                                max_violation=max_violation)
        ok &= bool(jnp.allclose(ci, ci_r, rtol=1e-4, atol=1e-3))
        ok &= bool(jnp.allclose(cs, cs_r, rtol=1e-4, atol=1e-3))

    # --- shape that exercises the tiled grid (4 row tiles of 8) ---
    N2, D2, hardnum2 = 32, 128, 4
    im2 = jax.random.normal(k_im2, (N2, D2), dtype=jnp.float32)
    s2 = jax.random.normal(k_s2, (N2, D2), dtype=jnp.float32)
    for max_violation in (False, True):
        ci, cs = contrastive_loss(im2, s2, hardnum=hardnum2, margin=margin,
                                  max_violation=max_violation, block_rows=8)
        ci = jax.block_until_ready(ci)
        cs = jax.block_until_ready(cs)
        ci_r, cs_r = _reference(im2, s2, hardnum=hardnum2, margin=margin,
                                max_violation=max_violation)
        ok &= bool(jnp.allclose(ci, ci_r, rtol=1e-4, atol=1e-3))
        ok &= bool(jnp.allclose(cs, cs_r, rtol=1e-4, atol=1e-3))

        # bf16 MXU fast path (f32 accumulate + f32 epilogue); compare against
        # the f32 reference evaluated on bf16-rounded inputs.
        ci_b, cs_b = contrastive_loss(im2, s2, hardnum=hardnum2, margin=margin,
                                      max_violation=max_violation,
                                      compute_dtype=jnp.bfloat16)
        ci_b = jax.block_until_ready(ci_b)
        cs_b = jax.block_until_ready(cs_b)
        im2_r = im2.astype(jnp.bfloat16).astype(jnp.float32)
        s2_r = s2.astype(jnp.bfloat16).astype(jnp.float32)
        ci_rb, cs_rb = _reference(im2_r, s2_r, hardnum=hardnum2, margin=margin,
                                  max_violation=max_violation)
        ok &= bool(jnp.allclose(ci_b, ci_rb, rtol=2e-3, atol=2e-2))
        ok &= bool(jnp.allclose(cs_b, cs_rb, rtol=2e-3, atol=2e-2))

    print("KERNEL_OK" if ok else "KERNEL_MISMATCH")
</pallas_src>

<mosaic_0001>
module attributes {stable_mosaic.version = 11 : i64} {
  func.func @_contrastive_kernel(%arg0: i32, %arg1: memref<8x32xf32, #tpu.memory_space<vmem>>, %arg2: memref<32x8xf32, #tpu.memory_space<vmem>>, %arg3: memref<8x1xf32, #tpu.memory_space<vmem>>, %arg4: memref<1x8xf32, #tpu.memory_space<vmem>>, %arg5: memref<8x1xi32, #tpu.memory_space<vmem>>, %arg6: memref<1x8xi32, #tpu.memory_space<vmem>>, %arg7: memref<1x8xf32, #tpu.memory_space<vmem>>, %arg8: memref<8x1xf32, #tpu.memory_space<vmem>>) attributes {dimension_semantics = [#tpu.dimension_semantics<parallel>], iteration_bounds = array<i64: 1>, scalar_prefetch = 0 : i64, scratch_operands = 0 : i64, tpu.core_type = #tpu.core_type<tc>, window_params = [{transform_indices = @transform_0, window_bounds = array<i64: 8, 32>}, {pipeline_mode = #tpu.pipeline_mode<synchronous>, transform_indices = @transform_1, window_bounds = array<i64: 32, 8>}, {transform_indices = @transform_2, window_bounds = array<i64: 8, 1>}, {pipeline_mode = #tpu.pipeline_mode<synchronous>, transform_indices = @transform_3, window_bounds = array<i64: 1, 8>}, {transform_indices = @transform_4, window_bounds = array<i64: 8, 1>}, {pipeline_mode = #tpu.pipeline_mode<synchronous>, transform_indices = @transform_5, window_bounds = array<i64: 1, 8>}, {transform_indices = @transform_6, window_bounds = array<i64: 1, 8>}, {transform_indices = @transform_7, window_bounds = array<i64: 8, 1>}]} {
    %c0 = arith.constant 0 : index
    %c0_0 = arith.constant 0 : index
    %0 = vector.load %arg1[%c0, %c0_0] : memref<8x32xf32, #tpu.memory_space<vmem>>, vector<8x32xf32>
    %c0_1 = arith.constant 0 : index
    %c0_2 = arith.constant 0 : index
    %1 = vector.load %arg2[%c0_1, %c0_2] : memref<32x8xf32, #tpu.memory_space<vmem>>, vector<32x8xf32>
    %cst = arith.constant dense<0.000000e+00> : vector<8x8xf32>
    %2 = tpu.matmul %0, %1, %cst {dimension_numbers = #tpu.dot_dimension_numbers<[1], [0], [0], [1], [0, 0, 1, 1], [], []>} : vector<8x32xf32>, vector<32x8xf32>, vector<8x8xf32> -> vector<8x8xf32>
    %c0_3 = arith.constant 0 : index
    %c0_4 = arith.constant 0 : index
    %3 = vector.load %arg3[%c0_3, %c0_4] : memref<8x1xf32, #tpu.memory_space<vmem>>, vector<8x1xf32>
    %4 = vector.broadcast %3 : vector<8x1xf32> to vector<8x8xf32>
    %5 = arith.subf %2, %4 : vector<8x8xf32>
    %cst_5 = arith.constant 0.000000e+00 : f32
    %6 = vector.broadcast %cst_5 : f32 to vector<8x8xf32>
    %7 = arith.maximumf %5, %6 : vector<8x8xf32>
    %c0_6 = arith.constant 0 : index
    %c0_7 = arith.constant 0 : index
    %8 = vector.load %arg4[%c0_6, %c0_7] : memref<1x8xf32, #tpu.memory_space<vmem>>, vector<1x8xf32>
    %9 = vector.broadcast %8 : vector<1x8xf32> to vector<8x8xf32>
    %10 = arith.subf %2, %9 : vector<8x8xf32>
    %cst_8 = arith.constant 0.000000e+00 : f32
    %11 = vector.broadcast %cst_8 : f32 to vector<8x8xf32>
    %12 = arith.maximumf %10, %11 : vector<8x8xf32>
    %cst_9 = arith.constant dense<0.000000e+00> : vector<8xf32>
    %13 = vector.multi_reduction <add>, %12, %cst_9 [0] : vector<8x8xf32> to vector<8xf32>
    %14 = vector.shape_cast %13 : vector<8xf32> to vector<1x8xf32>
    %c0_10 = arith.constant 0 : index
    %c0_11 = arith.constant 0 : index
    %15 = vector.load %arg7[%c0_10, %c0_11] : memref<1x8xf32, #tpu.memory_space<vmem>>, vector<1x8xf32>
    tpu.vector_store %arg7[%c0_10, %c0_11], %14 {strides = array<i32>} : memref<1x8xf32, #tpu.memory_space<vmem>>, vector<1x8xf32>,
    %cst_12 = arith.constant dense<0.000000e+00> : vector<8xf32>
    %16 = vector.multi_reduction <add>, %7, %cst_12 [1] : vector<8x8xf32> to vector<8xf32>
    %17 = vector.shape_cast %16 : vector<8xf32> to vector<8x1xf32>
    %c0_13 = arith.constant 0 : index
    %c0_14 = arith.constant 0 : index
    %18 = vector.load %arg8[%c0_13, %c0_14] : memref<8x1xf32, #tpu.memory_space<vmem>>, vector<8x1xf32>
    tpu.vector_store %arg8[%c0_13, %c0_14], %17 {strides = array<i32>} : memref<8x1xf32, #tpu.memory_space<vmem>>, vector<8x1xf32>,
    return
  }
  func.func @transform_0(%arg0: i32) -> (i32, i32) {
    %c0_i32 = arith.constant 0 : i32
    %c0_i32_0 = arith.constant 0 : i32
    return %arg0, %c0_i32 : i32, i32
  }
  func.func @transform_1(%arg0: i32) -> (i32, i32) {
    %c0_i32 = arith.constant 0 : i32
    %c0_i32_0 = arith.constant 0 : i32
    %c0_i32_1 = arith.constant 0 : i32
    return %c0_i32, %c0_i32_0 : i32, i32
  }
  func.func @transform_2(%arg0: i32) -> (i32, i32) {
    %c0_i32 = arith.constant 0 : i32
    %c0_i32_0 = arith.constant 0 : i32
    return %arg0, %c0_i32 : i32, i32
  }
  func.func @transform_3(%arg0: i32) -> (i32, i32) {
    %c0_i32 = arith.constant 0 : i32
    %c0_i32_0 = arith.constant 0 : i32
    %c0_i32_1 = arith.constant 0 : i32
    return %c0_i32, %c0_i32_0 : i32, i32
  }
  func.func @transform_4(%arg0: i32) -> (i32, i32) {
    %c0_i32 = arith.constant 0 : i32
    %c0_i32_0 = arith.constant 0 : i32
    return %arg0, %c0_i32 : i32, i32
  }
  func.func @transform_5(%arg0: i32) -> (i32, i32) {
    %c0_i32 = arith.constant 0 : i32
    %c0_i32_0 = arith.constant 0 : i32
    %c0_i32_1 = arith.constant 0 : i32
    return %c0_i32, %c0_i32_0 : i32, i32
  }
  func.func @transform_6(%arg0: i32) -> (i32, i32) {
    %c0_i32 = arith.constant 0 : i32
    %c0_i32_0 = arith.constant 0 : i32
    return %arg0, %c0_i32 : i32, i32
  }
  func.func @transform_7(%arg0: i32) -> (i32, i32) {
    %c0_i32 = arith.constant 0 : i32
    %c0_i32_0 = arith.constant 0 : i32
    return %arg0, %c0_i32 : i32, i32
  }
}

module attributes {stable_mosaic.version = 11 : i64} {
  func.func @_contrastive_kernel(%arg0: i32, %arg1: memref<8x32xf32, #tpu.memory_space<vmem>>, %arg2: memref<32x8xf32, #tpu.memory_space<vmem>>, %arg3: memref<8x1xf32, #tpu.memory_space<vmem>>, %arg4: memref<1x8xf32, #tpu.memory_space<vmem>>, %arg5: memref<8x1xi32, #tpu.memory_space<vmem>>, %arg6: memref<1x8xi32, #tpu.memory_space<vmem>>, %arg7: memref<1x8xf32, #tpu.memory_space<vmem>>, %arg8: memref<8x1xf32, #tpu.memory_space<vmem>>) attributes {dimension_semantics = [#tpu.dimension_semantics<parallel>], iteration_bounds = array<i64: 1>, scalar_prefetch = 0 : i64, scratch_operands = 0 : i64, tpu.core_type = #tpu.core_type<tc>, window_params = [{transform_indices = @transform_0, window_bounds = array<i64: 8, 32>}, {pipeline_mode = #tpu.pipeline_mode<synchronous>, transform_indices = @transform_1, window_bounds = array<i64: 32, 8>}, {transform_indices = @transform_2, window_bounds = array<i64: 8, 1>}, {pipeline_mode = #tpu.pipeline_mode<synchronous>, transform_indices = @transform_3, window_bounds = array<i64: 1, 8>}, {transform_indices = @transform_4, window_bounds = array<i64: 8, 1>}, {pipeline_mode = #tpu.pipeline_mode<synchronous>, transform_indices = @transform_5, window_bounds = array<i64: 1, 8>}, {transform_indices = @transform_6, window_bounds = array<i64: 1, 8>}, {transform_indices = @transform_7, window_bounds = array<i64: 8, 1>}]} {
    %c0 = arith.constant 0 : index
    %c0_0 = arith.constant 0 : index
    %0 = vector.load %arg1[%c0, %c0_0] : memref<8x32xf32, #tpu.memory_space<vmem>>, vector<8x32xf32>
    %c0_1 = arith.constant 0 : index
    %c0_2 = arith.constant 0 : index
    %1 = vector.load %arg2[%c0_1, %c0_2] : memref<32x8xf32, #tpu.memory_space<vmem>>, vector<32x8xf32>
    %cst = arith.constant dense<0.000000e+00> : vector<8x8xf32>
    %2 = tpu.matmul %0, %1, %cst {dimension_numbers = #tpu.dot_dimension_numbers<[1], [0], [0], [1], [0, 0, 1, 1], [], []>} : vector<8x32xf32>, vector<32x8xf32>, vector<8x8xf32> -> vector<8x8xf32>
    %c0_3 = arith.constant 0 : index
    %c0_4 = arith.constant 0 : index
    %3 = vector.load %arg3[%c0_3, %c0_4] : memref<8x1xf32, #tpu.memory_space<vmem>>, vector<8x1xf32>
    %4 = vector.broadcast %3 : vector<8x1xf32> to vector<8x8xf32>
    %5 = arith.subf %2, %4 : vector<8x8xf32>
    %cst_5 = arith.constant 0.000000e+00 : f32
    %6 = vector.broadcast %cst_5 : f32 to vector<8x8xf32>
    %7 = arith.maximumf %5, %6 : vector<8x8xf32>
    %c0_6 = arith.constant 0 : index
    %c0_7 = arith.constant 0 : index
    %8 = vector.load %arg4[%c0_6, %c0_7] : memref<1x8xf32, #tpu.memory_space<vmem>>, vector<1x8xf32>
    %9 = vector.broadcast %8 : vector<1x8xf32> to vector<8x8xf32>
    %10 = arith.subf %2, %9 : vector<8x8xf32>
    %cst_8 = arith.constant 0.000000e+00 : f32
    %11 = vector.broadcast %cst_8 : f32 to vector<8x8xf32>
    %12 = arith.maximumf %10, %11 : vector<8x8xf32>
    %cst_9 = arith.constant dense<0.000000e+00> : vector<8xf32>
    %13 = vector.multi_reduction <add>, %12, %cst_9 [0] : vector<8x8xf32> to vector<8xf32>
    %14 = vector.shape_cast %13 : vector<8xf32> to vector<1x8xf32>
    %c0_10 = arith.constant 0 : index
    %c0_11 = arith.constant 0 : index
    %15 = vector.load %arg7[%c0_10, %c0_11] : memref<1x8xf32, #tpu.memory_space<vmem>>, vector<1x8xf32>
    tpu.vector_store %arg7[%c0_10, %c0_11], %14 {strides = array<i32>} : memref<1x8xf32, #tpu.memory_space<vmem>>, vector<1x8xf32>,
    %cst_12 = arith.constant dense<0.000000e+00> : vector<8xf32>
    %16 = vector.multi_reduction <add>, %7, %cst_12 [1] : vector<8x8xf32> to vector<8xf32>
    %17 = vector.shape_cast %16 : vector<8xf32> to vector<8x1xf32>
    %c0_13 = arith.constant 0 : index
    %c0_14 = arith.constant 0 : index
    %18 = vector.load %arg8[%c0_13, %c0_14] : memref<8x1xf32, #tpu.memory_space<vmem>>, vector<8x1xf32>
    tpu.vector_store %arg8[%c0_13, %c0_14], %17 {strides = array<i32>} : memref<8x1xf32, #tpu.memory_space<vmem>>, vector<8x1xf32>,
    return
  }
  func.func @transform_0(%arg0: i32) -> (i32, i32) {
    %c0_i32 = arith.constant 0 : i32
    %c0_i32_0 = arith.constant 0 : i32
    return %arg0, %c0_i32 : i32, i32
  }
  func.func @transform_1(%arg0: i32) -> (i32, i32) {
    %c0_i32 = arith.constant 0 : i32
    %c0_i32_0 = arith.constant 0 : i32
    %c0_i32_1 = arith.constant 0 : i32
    return %c0_i32, %c0_i32_0 : i32, i32
  }
  func.func @transform_2(%arg0: i32) -> (i32, i32) {
    %c0_i32 = arith.constant 0 : i32
    %c0_i32_0 = arith.constant 0 : i32
    return %arg0, %c0_i32 : i32, i32
  }
  func.func @transform_3(%arg0: i32) -> (i32, i32) {
    %c0_i32 = arith.constant 0 : i32
    %c0_i32_0 = arith.constant 0 : i32
    %c0_i32_1 = arith.constant 0 : i32
    return %c0_i32, %c0_i32_0 : i32, i32
  }
  func.func @transform_4(%arg0: i32) -> (i32, i32) {
    %c0_i32 = arith.constant 0 : i32
    %c0_i32_0 = arith.constant 0 : i32
    return %arg0, %c0_i32 : i32, i32
  }
  func.func @transform_5(%arg0: i32) -> (i32, i32) {
    %c0_i32 = arith.constant 0 : i32
    %c0_i32_0 = arith.constant 0 : i32
    %c0_i32_1 = arith.constant 0 : i32
    return %c0_i32, %c0_i32_0 : i32, i32
  }
  func.func @transform_6(%arg0: i32) -> (i32, i32) {
    %c0_i32 = arith.constant 0 : i32
    %c0_i32_0 = arith.constant 0 : i32
    return %arg0, %c0_i32 : i32, i32
  }
  func.func @transform_7(%arg0: i32) -> (i32, i32) {
    %c0_i32 = arith.constant 0 : i32
    %c0_i32_0 = arith.constant 0 : i32
    return %arg0, %c0_i32 : i32, i32
  }
}

</mosaic_0001>

<bundles_post_ra>
// kernel: tpu_custom_call.1
= control target key start
LH: loop header
LB: loop body
LE: loop exit
PB: predicated region body
PF: predicated region fallthrough
CT: control target
= control target key end

     0   :  { %v209_v3 = vmov 0.0|0.0   ;;  %vm210_vm0 = vmmov 0   ;;  %v211_v6 = vmov 0.0   ;;  %v212_v8 = vmov 0   ;;  %s290_s0 = inlined_call_operand.vmem [shape: f32[8,32], index: 0, kind: input, shape index: {}]   ;;  %s291_s1 = inlined_call_operand.vmem [shape: f32[32,8], index: 1, kind: input, shape index: {}]   ;;  %s292_s2 = inlined_call_operand.vmem [shape: f32[8,1], index: 2, kind: input, shape index: {}]   ;;  %s293_s3 = inlined_call_operand.vmem [shape: f32[1,8], index: 3, kind: input, shape index: {}]   ;;  %s294_s4 = inlined_call_operand.vmem [shape: s32[8,1], index: 4, kind: input, shape index: {}]   ;;  %s295_s5 = inlined_call_operand.vmem [shape: s32[1,8], index: 5, kind: input, shape index: {}]   ;;  %s296_s6 = inlined_call_operand.hbm [shape: f32[1,8], index: 6, kind: output, shape index: {0}]   ;;  %s297_s7 = inlined_call_operand.vmem [shape: f32[8,1], index: 7, kind: output, shape index: {1}]  }
   0x1   :  { %v27_v0 = vld [vmem:[%s291_s1] sm:$0xff]  ;;  %v28_v1 = vld [vmem:[%s291_s1 + $0x8] sm:$0xff]  ;;  %v29_v2 = vld [vmem:[%s291_s1 + $0x10] sm:$0xff]  ;;  %173 = vmatprep.subr.bf16.mxu0 %v209_v3  ;;  %170 = vmatprep.mubr.msk.f32.mxu0 %vm210_vm0, %v211_v6 }
   0x2   :  { %v174_v4 = vpack.c.bf16 %v28_v1, %v27_v0  ;;  %v30_v5 = vld [vmem:[%s291_s1 + $0x18] sm:$0xff]  ;;  %v105_v7 = vld [vmem:[%s292_s2] sm:$0xff]  ;;  %184 = vset.pattern.permute.xlu0 %v212_v8 }
   0x3   :  { %13 = vsyncpa [#allocation3], 0  ;;  %v177_v9 = vpack.c.bf16 %v30_v5, %v29_v2  ;;  %108 = vperm.xlu0 %184, %v105_v7   ;;  %v26_v10 = vld [vmem:[%s290_s0] sm:$0xff]  ;;  %vm31_vm1 = vcmask 261120   ;;  %vm122_vm2 = vcmask 64512   ;;  %vm130_vm3 = vcmask 57344  }
   0x4   :  { %175 = vmatpush3.bf16.msra.mxu0 %v174_v4  ;;  %v156_v12 = vld [vmem:[%s293_s3] ss:$0 sm:$0xff]  ;;  %s213_s0 = smov [#allocation2]  }
   0x5   :  { %176 = vmatprep.subr.bf16.mxu0 %v209_v3  ;;  %s143_s2 = sshll.u32 %s213_s0, 4  ;;  %s144_s2 = int_to_ptr.vmem [resolvable:$true] %s143_s2 }
   0x6   :  { %s185_s3 = scalar_lea.vmem %s144_s2, 16  ;;  %s189_s12 = scalar_lea.vmem %s144_s2, 32 }
   0x7   :  { %p186_p0 = scmp.ne.s32.totalorder %s144_s2, %s185_s3  ;;  %p190_p1 = scmp.lt.s32.totalorder %s144_s2, %s144_s2 }
   0x8   :  { %178 = vmatpush3.bf16.msra.mxu0 %v177_v9  ;;  %p191_p2 = scmp.lt.s32.totalorder %s189_s12, %s185_s3 }
   0xa   :  { %p192_p3 = por %p191_p2, %p190_p1 }
   0xb   :  { %171 = vmatmul.mubr.msk.f32.vlgmr.msra.gmra.mrb[0].mxu0 %vm31_vm1, %v26_v10 }
   0xc   :  { %p193_p4 = pnand %p192_p3, %p186_p0 }
  0x82   :  { %v109_v11 = vpop.permute.xlu0 %108 }
  0xde   :  { %v101_v13 = vpop.f32.mrb[0].mxu0 }
  0xdf   :  { %v111_v14 = vsub.f32 %v101_v13, %v109_v11  ;;  %v120_v15 = vsub.f32 %v101_v13, %v156_v12  ;;  %v172_v16 = vpop.f32.mrb[1].mxu0 }
  0xe1   :  { %v112_v17 = vmax.f32 %v111_v14, 0.0  ;;  %v121_v18 = vmax.f32 %v120_v15, 0.0 }
  0xe3   :  { %v123_v19 = vsel %vm122_vm2, %v121_v18, 0.0  ;;  %v132_v20 = vsel %vm122_vm2, %v112_v17, 0.0 }
  0xe4   :  { %v124_v21 = vrot.slane %v123_v19, 4  ;;  %133 = vadd.xlane.f32.xlu0 %v132_v20 }
  0xe6   :  { %v125_v22 = vadd.f32 %v124_v21, %v123_v19 }
  0xe8   :  { %v126_v23 = vrot.slane %v125_v22, 2 }
  0xea   :  { %v127_v24 = vadd.f32 %v126_v23, %v125_v22 }
  0xec   :  { %v128_v25 = vrot.slane %v127_v24, 1 }
  0xee   :  { %v129_v26 = vadd.f32 %v128_v25, %v127_v24 }
  0xf0   :  { %131 = vst.msk [vmem:[#allocation2] sm:$0x1] %vm130_vm3, %v129_v26 }
  0xf1   :  { %196 = shalt.err (!%p193_p4)
}
  0xf2   :  { %s197_s15 = scalar_lea.hbm %s296_s6, 16 }
  0xf3   :  { %p198_p5 = scmp.ne.s32.totalorder %s296_s6, %s197_s15  ;;  %p201_p6 = scmp.lt.u32.totalorder %s197_s15, %s296_s6 }
  0xf5   :  { %p203_p7 = pnand %p201_p6, %p198_p5 }
  0xf7   :  { %206 = shalt.err (!%p203_p7)
}
  0xf8   :  { %146 = dma.vmem_to_hbm [thread:$0]  %s144_s2, 16, %s296_s6, [#allocation3]   ;;  %vm135_vm4 = vcmask 7168  }
 0x171   :  { %v134_v27 = vpop.xlane.xlu0 %133 }
 0x172   :  { %136 = vst.msk [vmem:[%s297_s7] sm:$0xff] %vm135_vm4, %v134_v27 }
 0x173   :  { %207 = dma.done.wait [#allocation3], 16  }
 0x174   :  { %208 = vsyncadd [#allocation3], 4294967280 }
 0x175   :  { %154 = vsyncpa [#allocation3], 1 }

// kernel: tpu_custom_call.1
= control target key start
LH: loop header
LB: loop body
LE: loop exit
PB: predicated region body
PF: predicated region fallthrough
CT: control target
= control target key end

     0   :  { %v209_v3 = vmov 0.0|0.0   ;;  %vm210_vm0 = vmmov 0   ;;  %v211_v6 = vmov 0.0   ;;  %v212_v8 = vmov 0   ;;  %s290_s0 = inlined_call_operand.vmem [shape: f32[8,32], index: 0, kind: input, shape index: {}]   ;;  %s291_s1 = inlined_call_operand.vmem [shape: f32[32,8], index: 1, kind: input, shape index: {}]   ;;  %s292_s2 = inlined_call_operand.vmem [shape: f32[8,1], index: 2, kind: input, shape index: {}]   ;;  %s293_s3 = inlined_call_operand.vmem [shape: f32[1,8], index: 3, kind: input, shape index: {}]   ;;  %s294_s4 = inlined_call_operand.vmem [shape: s32[8,1], index: 4, kind: input, shape index: {}]   ;;  %s295_s5 = inlined_call_operand.vmem [shape: s32[1,8], index: 5, kind: input, shape index: {}]   ;;  %s296_s6 = inlined_call_operand.hbm [shape: f32[1,8], index: 6, kind: output, shape index: {0}]   ;;  %s297_s7 = inlined_call_operand.vmem [shape: f32[8,1], index: 7, kind: output, shape index: {1}]  }
   0x1   :  { %v27_v0 = vld [vmem:[%s291_s1] sm:$0xff]  ;;  %v28_v1 = vld [vmem:[%s291_s1 + $0x8] sm:$0xff]  ;;  %v29_v2 = vld [vmem:[%s291_s1 + $0x10] sm:$0xff]  ;;  %173 = vmatprep.subr.bf16.mxu0 %v209_v3  ;;  %170 = vmatprep.mubr.msk.f32.mxu0 %vm210_vm0, %v211_v6 }
   0x2   :  { %v174_v4 = vpack.c.bf16 %v28_v1, %v27_v0  ;;  %v30_v5 = vld [vmem:[%s291_s1 + $0x18] sm:$0xff]  ;;  %v105_v7 = vld [vmem:[%s292_s2] sm:$0xff]  ;;  %184 = vset.pattern.permute.xlu0 %v212_v8 }
   0x3   :  { %13 = vsyncpa [#allocation3], 0  ;;  %v177_v9 = vpack.c.bf16 %v30_v5, %v29_v2  ;;  %108 = vperm.xlu0 %184, %v105_v7   ;;  %v26_v10 = vld [vmem:[%s290_s0] sm:$0xff]  ;;  %vm31_vm1 = vcmask 261120   ;;  %vm122_vm2 = vcmask 64512   ;;  %vm130_vm3 = vcmask 57344  }
   0x4   :  { %175 = vmatpush3.bf16.msra.mxu0 %v174_v4  ;;  %v156_v12 = vld [vmem:[%s293_s3] ss:$0 sm:$0xff]  ;;  %s213_s0 = smov [#allocation2]  }
   0x5   :  { %176 = vmatprep.subr.bf16.mxu0 %v209_v3  ;;  %s143_s2 = sshll.u32 %s213_s0, 4  ;;  %s144_s2 = int_to_ptr.vmem [resolvable:$true] %s143_s2 }
   0x6   :  { %s185_s3 = scalar_lea.vmem %s144_s2, 16  ;;  %s189_s12 = scalar_lea.vmem %s144_s2, 32 }
   0x7   :  { %p186_p0 = scmp.ne.s32.totalorder %s144_s2, %s185_s3  ;;  %p190_p1 = scmp.lt.s32.totalorder %s144_s2, %s144_s2 }
   0x8   :  { %178 = vmatpush3.bf16.msra.mxu0 %v177_v9  ;;  %p191_p2 = scmp.lt.s32.totalorder %s189_s12, %s185_s3 }
   0xa   :  { %p192_p3 = por %p191_p2, %p190_p1 }
   0xb   :  { %171 = vmatmul.mubr.msk.f32.vlgmr.msra.gmra.mrb[0].mxu0 %vm31_vm1, %v26_v10 }
   0xc   :  { %p193_p4 = pnand %p192_p3, %p186_p0 }
  0x82   :  { %v109_v11 = vpop.permute.xlu0 %108 }
  0xde   :  { %v101_v13 = vpop.f32.mrb[0].mxu0 }
  0xdf   :  { %v111_v14 = vsub.f32 %v101_v13, %v109_v11  ;;  %v120_v15 = vsub.f32 %v101_v13, %v156_v12  ;;  %v172_v16 = vpop.f32.mrb[1].mxu0 }
  0xe1   :  { %v112_v17 = vmax.f32 %v111_v14, 0.0  ;;  %v121_v18 = vmax.f32 %v120_v15, 0.0 }
  0xe3   :  { %v123_v19 = vsel %vm122_vm2, %v121_v18, 0.0  ;;  %v132_v20 = vsel %vm122_vm2, %v112_v17, 0.0 }
  0xe4   :  { %v124_v21 = vrot.slane %v123_v19, 4  ;;  %133 = vadd.xlane.f32.xlu0 %v132_v20 }
  0xe6   :  { %v125_v22 = vadd.f32 %v124_v21, %v123_v19 }
  0xe8   :  { %v126_v23 = vrot.slane %v125_v22, 2 }
  0xea   :  { %v127_v24 = vadd.f32 %v126_v23, %v125_v22 }
  0xec   :  { %v128_v25 = vrot.slane %v127_v24, 1 }
  0xee   :  { %v129_v26 = vadd.f32 %v128_v25, %v127_v24 }
  0xf0   :  { %131 = vst.msk [vmem:[#allocation2] sm:$0x1] %vm130_vm3, %v129_v26 }
  0xf1   :  { %196 = shalt.err (!%p193_p4)
}
  0xf2   :  { %s197_s15 = scalar_lea.hbm %s296_s6, 16 }
  0xf3   :  { %p198_p5 = scmp.ne.s32.totalorder %s296_s6, %s197_s15  ;;  %p201_p6 = scmp.lt.u32.totalorder %s197_s15, %s296_s6 }
  0xf5   :  { %p203_p7 = pnand %p201_p6, %p198_p5 }
  0xf7   :  { %206 = shalt.err (!%p203_p7)
}
  0xf8   :  { %146 = dma.vmem_to_hbm [thread:$0]  %s144_s2, 16, %s296_s6, [#allocation3]   ;;  %vm135_vm4 = vcmask 7168  }
 0x171   :  { %v134_v27 = vpop.xlane.xlu0 %133 }
 0x172   :  { %136 = vst.msk [vmem:[%s297_s7] sm:$0xff] %vm135_vm4, %v134_v27 }
 0x173   :  { %207 = dma.done.wait [#allocation3], 16  }
 0x174   :  { %208 = vsyncadd [#allocation3], 4294967280 }
 0x175   :  { %154 = vsyncpa [#allocation3], 1 }

</bundles_post_ra>
